<compile_context>
chip_gen: v5e
topology: v5e:2x2
jax: 0.10.0
libtpu: 0.0.40
codegen_flags: <defaults>
</compile_context>

<pallas_src>
import functools

import jax
import jax.numpy as jnp
from jax.experimental import pallas as pl
from jax.experimental.pallas import tpu as pltpu


def _dropout_kernel(seed_ref, x_ref, o_ref, *, tile_rows, lane,
                    threshold_i31, scale):
    """Inverted dropout on one (tile_rows, lane) block."""
    shape = x_ref.shape
    row = jax.lax.broadcasted_iota(jnp.int32, shape, 0).astype(jnp.uint32)
    col = jax.lax.broadcasted_iota(jnp.int32, shape, 1).astype(jnp.uint32)
    base = (pl.program_id(0) * tile_rows).astype(jnp.uint32)
    idx = (base + row) * jnp.uint32(lane) + col            # global flat index

    # Stateless per-element hash (lowbias32 mixer), seeded.
    key = seed_ref[0].astype(jnp.uint32) * jnp.uint32(0x9E3779B9)
    v = idx ^ key
    v = v ^ (v >> 16)
    v = v * jnp.uint32(0x7FEB352D)
    v = v ^ (v >> 15)
    v = v * jnp.uint32(0x846CA68B)
    v = v ^ (v >> 16)

    # Uniform 31-bit value; keep iff r31 >= p * 2^31  ->  P(keep) = 1 - p.
    r31 = (v >> 1).astype(jnp.int32)
    x = x_ref[...]
    scaled = x * jnp.asarray(scale, x.dtype)
    zero = jnp.zeros((), dtype=x.dtype)
    o_ref[...] = jnp.where(r31 >= jnp.int32(threshold_i31), scaled, zero)


_LANE_WIDTHS = (2048, 1024, 512, 256, 128)


def mc_dropout(x, seed, p=0.5, training=True, force_dropout=False):
    """Pallas implementation of MCDropout.forward."""
    if not (training or force_dropout) or p <= 0.0:
        return x
    if p >= 1.0:
        return jnp.zeros_like(x)

    orig_shape = x.shape
    flat = x.reshape(-1)
    n = flat.shape[0]

    # Only pad the lane dimension when unavoidable (n not a multiple of 128).
    pad = (-n) % 128
    if pad:
        flat = jnp.pad(flat, (0, pad))
    n_pad = n + pad

    # Widest lane dimension that divides the element count -> wide stores.
    lane = next(w for w in _LANE_WIDTHS if n_pad % w == 0)
    rows = n_pad // lane
    x2d = flat.reshape(rows, lane)

    # ~1 MiB blocks: ~86% of HBM roofline, ~4 MiB VMEM with double buffering
    # (in + out), fine on v5e/v6e/v7x.  Partial last block handled by Pallas
    # boundary masking (grid = cdiv).
    itemsize = x.dtype.itemsize
    target_rows = max(8, ((1 << 20) // (lane * itemsize)) // 8 * 8)
    tile_rows = rows if rows <= target_rows else target_rows
    grid = (pl.cdiv(rows, tile_rows),)

    threshold_i31 = min(int(round(p * (1 << 31))), (1 << 31) - 1)
    scale = 1.0 / (1.0 - p)
    seed_arr = jnp.asarray([seed], dtype=jnp.int32)

    kernel = functools.partial(
        _dropout_kernel, tile_rows=tile_rows, lane=lane,
        threshold_i31=threshold_i31, scale=scale)

    out2d = pl.pallas_call(
        kernel,
        out_shape=jax.ShapeDtypeStruct(x2d.shape, x.dtype),
        grid_spec=pltpu.PrefetchScalarGridSpec(
            num_scalar_prefetch=1,
            grid=grid,
            in_specs=[pl.BlockSpec((tile_rows, lane), lambda i, seed: (i, 0))],
            out_specs=pl.BlockSpec((tile_rows, lane), lambda i, seed: (i, 0)),
        ),
        compiler_params=pltpu.CompilerParams(
            dimension_semantics=("parallel",)),
    )(seed_arr, x2d)

    out_flat = out2d.reshape(-1)
    if pad:
        out_flat = out_flat[:n]
    return out_flat.reshape(orig_shape)


if __name__ == "__main__":
    key = jax.random.PRNGKey(0)
    x = jax.random.normal(key, (2, 4, 16, 16), dtype=jnp.float32)
    p = 0.5

    # training=True -> dropout active
    y = jax.block_until_ready(mc_dropout(x, seed=0, p=p, training=True))
    assert y.shape == x.shape and y.dtype == x.dtype
    kept = y != 0.0
    assert jnp.allclose(jnp.where(kept, y, 0.0),
                        jnp.where(kept, x / (1.0 - p), 0.0), atol=1e-5)
    frac = float(jnp.mean(kept.astype(jnp.float32)))
    assert 0.3 < frac < 0.7, frac

    # eval mode (training=False, force_dropout=False) -> identity
    y_eval = jax.block_until_ready(
        mc_dropout(x, seed=0, p=p, training=False, force_dropout=False))
    assert jnp.array_equal(y_eval, x)

    # force_dropout=True keeps dropout active even when not training (the
    # "MC" part of MCDropout).
    y_force = jax.block_until_ready(
        mc_dropout(x, seed=0, p=p, training=False, force_dropout=True))
    assert jnp.array_equal(y_force, y)

    # Larger input: exercises a multi-tile grid with a partial boundary block,
    # plus determinism for a fixed seed.
    x2 = jax.random.normal(jax.random.PRNGKey(1), (2, 100, 32, 32),
                           dtype=jnp.float32)
    y2 = jax.block_until_ready(mc_dropout(x2, seed=7, p=0.3, training=True))
    y2b = jax.block_until_ready(mc_dropout(x2, seed=7, p=0.3, training=True))
    kept2 = y2 != 0.0
    assert jnp.allclose(jnp.where(kept2, y2, 0.0),
                        jnp.where(kept2, x2 / 0.7, 0.0), atol=1e-5)
    assert jnp.array_equal(y2, y2b)
    frac2 = float(jnp.mean(kept2.astype(jnp.float32)))
    assert 0.65 < frac2 < 0.75, frac2

    # Element count not a multiple of 128: exercises pad/slice fallback.
    x3 = jax.random.normal(jax.random.PRNGKey(2), (3, 5, 7, 11),
                           dtype=jnp.float32)
    y3 = jax.block_until_ready(mc_dropout(x3, seed=3, p=0.5, training=True))
    kept3 = y3 != 0.0
    assert jnp.allclose(jnp.where(kept3, y3, 0.0),
                        jnp.where(kept3, x3 * 2.0, 0.0), atol=1e-5)

    print("KERNEL_OK")
</pallas_src>

<mosaic_0001>
module attributes {stable_mosaic.version = 11 : i64} {
  func.func @_dropout_kernel(%arg0: i32, %arg1: memref<1xi32, #tpu.memory_space<smem>>, %arg2: memref<1x2048xf32, #tpu.memory_space<vmem>>, %arg3: memref<1x2048xf32, #tpu.memory_space<vmem>>) attributes {dimension_semantics = [#tpu.dimension_semantics<parallel>], iteration_bounds = array<i64: 1>, scalar_prefetch = 1 : i64, scratch_operands = 0 : i64, tpu.core_type = #tpu.core_type<tc>, window_params = [{transform_indices = @transform_0, window_bounds = array<i64: 1, 2048>}, {transform_indices = @transform_1, window_bounds = array<i64: 1, 2048>}]} {
    %0 = tpu.iota {dimensions = array<i32: 0>} : vector<1x2048xi32>
    %1 = tpu.iota {dimensions = array<i32: 1>} : vector<1x2048xi32>
    %c1_i32 = arith.constant 1 : i32
    %2 = arith.muli %arg0, %c1_i32 : i32
    %3 = vector.broadcast %2 : i32 to vector<1x2048xi32>
    %4 = arith.addi %3, %0 : vector<1x2048xi32>
    %c2048_i32 = arith.constant 2048 : i32
    %5 = vector.broadcast %c2048_i32 : i32 to vector<1x2048xi32>
    %6 = arith.muli %4, %5 : vector<1x2048xi32>
    %7 = arith.addi %6, %1 : vector<1x2048xi32>
    %c0 = arith.constant 0 : index
    %8 = memref.load %arg1[%c0] : memref<1xi32, #tpu.memory_space<smem>>
    %c-1640531527_i32 = arith.constant -1640531527 : i32
    %9 = arith.muli %8, %c-1640531527_i32 : i32
    %10 = vector.broadcast %9 : i32 to vector<1x2048xi32>
    %11 = arith.xori %7, %10 : vector<1x2048xi32>
    %c16_i32 = arith.constant 16 : i32
    %12 = vector.broadcast %c16_i32 : i32 to vector<1x2048xi32>
    %13 = arith.shrui %11, %12 : vector<1x2048xi32>
    %14 = arith.xori %11, %13 : vector<1x2048xi32>
    %c2146121005_i32 = arith.constant 2146121005 : i32
    %15 = vector.broadcast %c2146121005_i32 : i32 to vector<1x2048xi32>
    %16 = arith.muli %14, %15 : vector<1x2048xi32>
    %c15_i32 = arith.constant 15 : i32
    %17 = vector.broadcast %c15_i32 : i32 to vector<1x2048xi32>
    %18 = arith.shrui %16, %17 : vector<1x2048xi32>
    %19 = arith.xori %16, %18 : vector<1x2048xi32>
    %c-2073254261_i32 = arith.constant -2073254261 : i32
    %20 = vector.broadcast %c-2073254261_i32 : i32 to vector<1x2048xi32>
    %21 = arith.muli %19, %20 : vector<1x2048xi32>
    %c16_i32_0 = arith.constant 16 : i32
    %22 = vector.broadcast %c16_i32_0 : i32 to vector<1x2048xi32>
    %23 = arith.shrui %21, %22 : vector<1x2048xi32>
    %24 = arith.xori %21, %23 : vector<1x2048xi32>
    %c1_i32_1 = arith.constant 1 : i32
    %25 = vector.broadcast %c1_i32_1 : i32 to vector<1x2048xi32>
    %26 = arith.shrui %24, %25 : vector<1x2048xi32>
    %c0_2 = arith.constant 0 : index
    %c0_3 = arith.constant 0 : index
    %27 = vector.load %arg2[%c0_2, %c0_3] : memref<1x2048xf32, #tpu.memory_space<vmem>>, vector<1x2048xf32>
    %cst = arith.constant 2.000000e+00 : f32
    %28 = vector.broadcast %cst : f32 to vector<1x2048xf32>
    %29 = arith.mulf %27, %28 : vector<1x2048xf32>
    %c1073741824_i32 = arith.constant 1073741824 : i32
    %30 = vector.broadcast %c1073741824_i32 : i32 to vector<1x2048xi32>
    %31 = arith.cmpi sge, %26, %30 : vector<1x2048xi32>
    %cst_4 = arith.constant 0.000000e+00 : f32
    %32 = vector.broadcast %cst_4 : f32 to vector<1x2048xf32>
    %33 = arith.select %31, %29, %32 : vector<1x2048xi1>, vector<1x2048xf32>
    %c0_5 = arith.constant 0 : index
    %c0_6 = arith.constant 0 : index
    %34 = vector.load %arg3[%c0_5, %c0_6] : memref<1x2048xf32, #tpu.memory_space<vmem>>, vector<1x2048xf32>
    tpu.vector_store %arg3[%c0_5, %c0_6], %33 {strides = array<i32>} : memref<1x2048xf32, #tpu.memory_space<vmem>>, vector<1x2048xf32>,
    return
  }
  func.func @transform_0(%arg0: i32, %arg1: memref<1xi32, #tpu.memory_space<smem>>) -> (i32, i32) {
    %c0_i32 = arith.constant 0 : i32
    %c0_i32_0 = arith.constant 0 : i32
    return %arg0, %c0_i32 : i32, i32
  }
  func.func @transform_1(%arg0: i32, %arg1: memref<1xi32, #tpu.memory_space<smem>>) -> (i32, i32) {
    %c0_i32 = arith.constant 0 : i32
    %c0_i32_0 = arith.constant 0 : i32
    return %arg0, %c0_i32 : i32, i32
  }
}

</mosaic_0001>

<bundles_post_ra>
// kernel: tpu_custom_call.1
= control target key start
LH: loop header
LB: loop body
LE: loop exit
PB: predicated region body
PF: predicated region fallthrough
CT: control target
= control target key end

     0   :  { %8 = vsyncpa [#allocation5], 0  ;;  %s550_s0 = inlined_call_operand.<no memory space> [shape: s32[1], index: 0, kind: input, shape index: {}]   ;;  %s551_s1 = inlined_call_operand.hbm [shape: f32[1,2048], index: 1, kind: input, shape index: {}]   ;;  %s552_s2 = inlined_call_operand.hbm [shape: f32[1,2048], index: 2, kind: output, shape index: {}]  }
   0x1   :  { %9 = vsyncpa [#allocation6], 0  ;;  %s15_s11 = sshll.u32 %s551_s1, 4  ;;  %s422_s12 = smov [#allocation4]   ;;  %s16_s11 = int_to_ptr.hbm [resolvable:$true] %s15_s11 }
   0x2   :  { %s17_s13 = sshll.u32 %s422_s12, 4  ;;  %s18_s13 = int_to_ptr.vmem [resolvable:$true] %s17_s13 }
   0x3   :  { %20 = dma.hbm_to_vmem [thread:$0]  %s16_s11, 256, %s18_s13, [#allocation5]  }
   0x4   :  { %418 = dma.done.wait [#allocation5], 256  }
   0x5   :  { %419 = vsyncadd [#allocation5], 4294967040  ;;  %v25_v0 = vlaneseq  ;;  %s64_s16 = smul.u32 2654435769, %s550_s0  ;;  %s423_s0 = smov [#allocation7]  }
   0x6   :  { %s356_s1 = sshll.u32 %s423_s0, 4  ;;  %s358_s19 = sshll.u32 %s552_s2, 4  ;;  %s357_s1 = int_to_ptr.vmem [resolvable:$true] %s356_s1  ;;  %s359_s19 = int_to_ptr.hbm [resolvable:$true] %s358_s19 }
   0x7   :  { %v28_v1 = vand.u32 127, %v25_v0  ;;  %v26_v2 = vshrl.u32 %v25_v0, 7  ;;  %v65_v7 = vstv %s64_s16 }
   0x9   :  { %v29_v3 = vadd.s32 128, %v28_v1  ;;  %v30_v4 = vadd.s32 256, %v28_v1  ;;  %v31_v5 = vadd.s32 384, %v28_v1  ;;  %v32_v6 = vadd.s32 512, %v28_v1 }
   0xa   :  { %v33_v8 = vadd.s32 640, %v28_v1  ;;  %v34_v9 = vadd.s32 768, %v28_v1  ;;  %v35_v10 = vadd.s32 896, %v28_v1  ;;  %v46_v11 = vmul.u32 2048, %v26_v2 }
   0xb   :  { %v36_v12 = vadd.s32 1024, %v28_v1  ;;  %v37_v13 = vadd.s32 1152, %v28_v1  ;;  %v38_v14 = vadd.s32 1280, %v28_v1  ;;  %v39_v15 = vadd.s32 1408, %v28_v1 }
   0xc   :  { %v40_v16 = vadd.s32 1536, %v28_v1  ;;  %v41_v17 = vadd.s32 1664, %v28_v1  ;;  %v47_v18 = vadd.s32 %v46_v11, %v28_v1  ;;  %v48_v19 = vadd.s32 %v46_v11, %v29_v3 }
   0xd   :  { %v42_v20 = vadd.s32 1792, %v28_v1  ;;  %v49_v21 = vadd.s32 %v46_v11, %v30_v4  ;;  %v50_v22 = vadd.s32 %v46_v11, %v31_v5  ;;  %v51_v23 = vadd.s32 %v46_v11, %v32_v6 }
   0xe   :  { %v43_v24 = vadd.s32 1920, %v28_v1  ;;  %v52_v25 = vadd.s32 %v46_v11, %v33_v8  ;;  %v53_v26 = vadd.s32 %v46_v11, %v34_v9  ;;  %v54_v27 = vadd.s32 %v46_v11, %v35_v10 }
   0xf   :  { %v55_v28 = vadd.s32 %v46_v11, %v36_v12  ;;  %v56_v29 = vadd.s32 %v46_v11, %v37_v13  ;;  %v57_v30 = vadd.s32 %v46_v11, %v38_v14  ;;  %v58_v31 = vadd.s32 %v46_v11, %v39_v15 }
  0x10   :  { %v59_v32 = vadd.s32 %v46_v11, %v40_v16  ;;  %v60_v33 = vadd.s32 %v46_v11, %v41_v17  ;;  %v66_v34 = vxor.u32 %v65_v7, %v47_v18  ;;  %v67_v35 = vxor.u32 %v65_v7, %v48_v19 }
  0x11   :  { %v61_v36 = vadd.s32 %v46_v11, %v42_v20  ;;  %v68_v37 = vxor.u32 %v65_v7, %v49_v21  ;;  %v69_v38 = vxor.u32 %v65_v7, %v50_v22  ;;  %v70_v39 = vxor.u32 %v65_v7, %v51_v23 }
  0x12   :  { %v62_v40 = vadd.s32 %v46_v11, %v43_v24  ;;  %v71_v41 = vxor.u32 %v65_v7, %v52_v25  ;;  %v72_v42 = vxor.u32 %v65_v7, %v53_v26  ;;  %v73_v43 = vxor.u32 %v65_v7, %v54_v27 }
  0x13   :  { %v74_v44 = vxor.u32 %v65_v7, %v55_v28  ;;  %v75_v45 = vxor.u32 %v65_v7, %v56_v29  ;;  %v76_v46 = vxor.u32 %v65_v7, %v57_v30  ;;  %v77_v47 = vxor.u32 %v65_v7, %v58_v31 }
  0x14   :  { %v78_v48 = vxor.u32 %v65_v7, %v59_v32  ;;  %v79_v49 = vxor.u32 %v65_v7, %v60_v33  ;;  %v82_v50 = vshrl.u32 %v66_v34, 16  ;;  %v83_v51 = vshrl.u32 %v67_v35, 16 }
  0x15   :  { %v80_v52 = vxor.u32 %v65_v7, %v61_v36  ;;  %v84_v53 = vshrl.u32 %v68_v37, 16  ;;  %v85_v54 = vshrl.u32 %v69_v38, 16  ;;  %v86_v55 = vshrl.u32 %v70_v39, 16 }
  0x16   :  { %v81_v56 = vxor.u32 %v65_v7, %v62_v40  ;;  %v87_v57 = vshrl.u32 %v71_v41, 16  ;;  %v88_v58 = vshrl.u32 %v72_v42, 16  ;;  %v89_v59 = vshrl.u32 %v73_v43, 16 }
  0x17   :  { %v90_v60 = vshrl.u32 %v74_v44, 16  ;;  %v91_v61 = vshrl.u32 %v75_v45, 16  ;;  %v92_v62 = vshrl.u32 %v76_v46, 16  ;;  %v93_v63 = vshrl.u32 %v77_v47, 16 }
  0x18   :  { %v94_v0 = vshrl.u32 %v78_v48, 16  ;;  %v95_v1 = vshrl.u32 %v79_v49, 16  ;;  %v98_v2 = vxor.u32 %v82_v50, %v66_v34  ;;  %v99_v3 = vxor.u32 %v83_v51, %v67_v35 }
  0x19   :  { %v96_v4 = vshrl.u32 %v80_v52, 16  ;;  %v100_v5 = vxor.u32 %v84_v53, %v68_v37  ;;  %v101_v6 = vxor.u32 %v85_v54, %v69_v38  ;;  %v102_v8 = vxor.u32 %v86_v55, %v70_v39 }
  0x1a   :  { %v97_v9 = vshrl.u32 %v81_v56, 16  ;;  %v103_v10 = vxor.u32 %v87_v57, %v71_v41  ;;  %v104_v11 = vxor.u32 %v88_v58, %v72_v42  ;;  %v105_v12 = vxor.u32 %v89_v59, %v73_v43 }
  0x1b   :  { %v106_v7 = vxor.u32 %v90_v60, %v74_v44  ;;  %v107_v13 = vxor.u32 %v91_v61, %v75_v45  ;;  %v108_v14 = vxor.u32 %v92_v62, %v76_v46  ;;  %v109_v15 = vxor.u32 %v93_v63, %v77_v47 }
  0x1c   :  { %v110_v16 = vxor.u32 %v94_v0, %v78_v48  ;;  %v111_v17 = vxor.u32 %v95_v1, %v79_v49  ;;  %v114_v18 = vmul.u32 2146121005, %v98_v2  ;;  %v115_v19 = vmul.u32 2146121005, %v99_v3 }
  0x1d   :  { %v112_v20 = vxor.u32 %v96_v4, %v80_v52  ;;  %v116_v21 = vmul.u32 2146121005, %v100_v5  ;;  %v117_v22 = vmul.u32 2146121005, %v101_v6  ;;  %v118_v23 = vmul.u32 2146121005, %v102_v8 }
  0x1e   :  { %v113_v24 = vxor.u32 %v97_v9, %v81_v56  ;;  %v119_v25 = vmul.u32 2146121005, %v103_v10  ;;  %v120_v26 = vmul.u32 2146121005, %v104_v11  ;;  %v121_v27 = vmul.u32 2146121005, %v105_v12 }
  0x1f   :  { %v122_v28 = vmul.u32 2146121005, %v106_v7  ;;  %v123_v29 = vmul.u32 2146121005, %v107_v13  ;;  %v124_v30 = vmul.u32 2146121005, %v108_v14 }
  0x20   :  { %v125_v31 = vmul.u32 2146121005, %v109_v15  ;;  %v126_v32 = vmul.u32 2146121005, %v110_v16  ;;  %v127_v33 = vmul.u32 2146121005, %v111_v17 }
  0x21   :  { %v128_v34 = vmul.u32 2146121005, %v112_v20  ;;  %v130_v35 = vshrl.u32 %v114_v18, 15  ;;  %v131_v36 = vshrl.u32 %v115_v19, 15  ;;  %v132_v37 = vshrl.u32 %v116_v21, 15 }
  0x22   :  { %v129_v38 = vmul.u32 2146121005, %v113_v24  ;;  %v133_v39 = vshrl.u32 %v117_v22, 15  ;;  %v134_v40 = vshrl.u32 %v118_v23, 15  ;;  %v135_v41 = vshrl.u32 %v119_v25, 15 }
  0x23   :  { %v136_v42 = vshrl.u32 %v120_v26, 15  ;;  %v137_v43 = vshrl.u32 %v121_v27, 15  ;;  %v138_v44 = vshrl.u32 %v122_v28, 15  ;;  %v139_v45 = vshrl.u32 %v123_v29, 15 }
  0x24   :  { %v140_v46 = vshrl.u32 %v124_v30, 15  ;;  %v141_v47 = vshrl.u32 %v125_v31, 15  ;;  %v142_v48 = vshrl.u32 %v126_v32, 15  ;;  %v143_v49 = vshrl.u32 %v127_v33, 15 }
  0x25   :  { %v144_v50 = vshrl.u32 %v128_v34, 15  ;;  %v146_v51 = vxor.u32 %v130_v35, %v114_v18  ;;  %v147_v52 = vxor.u32 %v131_v36, %v115_v19  ;;  %v148_v53 = vxor.u32 %v132_v37, %v116_v21 }
  0x26   :  { %v145_v54 = vshrl.u32 %v129_v38, 15  ;;  %v149_v55 = vxor.u32 %v133_v39, %v117_v22  ;;  %v150_v56 = vxor.u32 %v134_v40, %v118_v23  ;;  %v151_v57 = vxor.u32 %v135_v41, %v119_v25 }
  0x27   :  { %v152_v58 = vxor.u32 %v136_v42, %v120_v26  ;;  %v153_v59 = vxor.u32 %v137_v43, %v121_v27  ;;  %v154_v60 = vxor.u32 %v138_v44, %v122_v28  ;;  %v155_v61 = vxor.u32 %v139_v45, %v123_v29 }
  0x28   :  { %v156_v62 = vxor.u32 %v140_v46, %v124_v30  ;;  %v157_v63 = vxor.u32 %v141_v47, %v125_v31  ;;  %v158_v0 = vxor.u32 %v142_v48, %v126_v32  ;;  %v159_v1 = vxor.u32 %v143_v49, %v127_v33 }
  0x29   :  { %v160_v2 = vxor.u32 %v144_v50, %v128_v34  ;;  %v162_v3 = vmul.u32 2221713035, %v146_v51  ;;  %v163_v4 = vmul.u32 2221713035, %v147_v52  ;;  %v164_v5 = vmul.u32 2221713035, %v148_v53 }
  0x2a   :  { %v161_v6 = vxor.u32 %v145_v54, %v129_v38  ;;  %v165_v8 = vmul.u32 2221713035, %v149_v55  ;;  %v166_v9 = vmul.u32 2221713035, %v150_v56  ;;  %v167_v10 = vmul.u32 2221713035, %v151_v57 }
  0x2b   :  { %v168_v11 = vmul.u32 2221713035, %v152_v58  ;;  %v169_v12 = vmul.u32 2221713035, %v153_v59  ;;  %v170_v7 = vmul.u32 2221713035, %v154_v60 }
  0x2c   :  { %v171_v13 = vmul.u32 2221713035, %v155_v61  ;;  %v172_v14 = vmul.u32 2221713035, %v156_v62  ;;  %v173_v15 = vmul.u32 2221713035, %v157_v63 }
  0x2d   :  { %v174_v16 = vmul.u32 2221713035, %v158_v0  ;;  %v175_v17 = vmul.u32 2221713035, %v159_v1  ;;  %v176_v18 = vmul.u32 2221713035, %v160_v2 }
  0x2e   :  { %v177_v19 = vmul.u32 2221713035, %v161_v6  ;;  %v178_v20 = vshrl.u32 %v162_v3, 16  ;;  %v179_v21 = vshrl.u32 %v163_v4, 16  ;;  %v180_v22 = vshrl.u32 %v164_v5, 16  ;;  %v226_v59 = vld [vmem:[#allocation4] sm:$0xff] }
  0x2f   :  { %v181_v23 = vshrl.u32 %v165_v8, 16  ;;  %v182_v24 = vshrl.u32 %v166_v9, 16  ;;  %v183_v25 = vshrl.u32 %v167_v10, 16  ;;  %v184_v26 = vshrl.u32 %v168_v11, 16  ;;  %v227_v60 = vld [vmem:[#allocation4 + $0x8] sm:$0xff] }
  0x30   :  { %v185_v27 = vshrl.u32 %v169_v12, 16  ;;  %v186_v28 = vshrl.u32 %v170_v7, 16  ;;  %v187_v29 = vshrl.u32 %v171_v13, 16  ;;  %v188_v30 = vshrl.u32 %v172_v14, 16 }
  0x31   :  { %v189_v31 = vshrl.u32 %v173_v15, 16  ;;  %v190_v32 = vshrl.u32 %v174_v16, 16  ;;  %v191_v33 = vshrl.u32 %v175_v17, 16  ;;  %v192_v34 = vshrl.u32 %v176_v18, 16 }
  0x32   :  { %v193_v35 = vshrl.u32 %v177_v19, 16  ;;  %v194_v36 = vxor.u32 %v178_v20, %v162_v3  ;;  %v195_v37 = vxor.u32 %v179_v21, %v163_v4  ;;  %v196_v38 = vxor.u32 %v180_v22, %v164_v5 }
  0x33   :  { %v197_v39 = vxor.u32 %v181_v23, %v165_v8  ;;  %v198_v40 = vxor.u32 %v182_v24, %v166_v9  ;;  %v199_v41 = vxor.u32 %v183_v25, %v167_v10  ;;  %v200_v42 = vxor.u32 %v184_v26, %v168_v11 }
  0x34   :  { %v201_v43 = vxor.u32 %v185_v27, %v169_v12  ;;  %v202_v44 = vxor.u32 %v186_v28, %v170_v7  ;;  %v203_v45 = vxor.u32 %v187_v29, %v171_v13  ;;  %v204_v46 = vxor.u32 %v188_v30, %v172_v14 }
  0x35   :  { %v205_v47 = vxor.u32 %v189_v31, %v173_v15  ;;  %v206_v48 = vxor.u32 %v190_v32, %v174_v16  ;;  %v207_v49 = vxor.u32 %v191_v33, %v175_v17  ;;  %v208_v50 = vxor.u32 %v192_v34, %v176_v18 }
  0x36   :  { %v209_v51 = vxor.u32 %v193_v35, %v177_v19  ;;  %v210_v52 = vshrl.u32 %v194_v36, 1  ;;  %v211_v53 = vshrl.u32 %v195_v37, 1  ;;  %v212_v54 = vshrl.u32 %v196_v38, 1 }
  0x37   :  { %v213_v55 = vshrl.u32 %v197_v39, 1  ;;  %v214_v56 = vshrl.u32 %v198_v40, 1  ;;  %v215_v57 = vshrl.u32 %v199_v41, 1  ;;  %v216_v58 = vshrl.u32 %v200_v42, 1 }
  0x38   :  { %v217_v61 = vshrl.u32 %v201_v43, 1  ;;  %v218_v62 = vshrl.u32 %v202_v44, 1  ;;  %v219_v63 = vshrl.u32 %v203_v45, 1  ;;  %v220_v0 = vshrl.u32 %v204_v46, 1 }
  0x39   :  { %v221_v1 = vshrl.u32 %v205_v47, 1  ;;  %v222_v2 = vshrl.u32 %v206_v48, 1  ;;  %v223_v3 = vshrl.u32 %v207_v49, 1  ;;  %v224_v4 = vshrl.u32 %v208_v50, 1 }
  0x3a   :  { %v225_v5 = vshrl.u32 %v209_v51, 1  ;;  %v228_v6 = vmul.f32 2.0, %v226_v59  ;;  %v229_v8 = vmul.f32 2.0, %v227_v60  ;;  %vm445_vm0 = vcmp.ge.s32.totalorder %v210_v52, 1073741824 }
  0x3b   :  { %vm449_vm1 = vcmp.ge.s32.totalorder %v211_v53, 1073741824  ;;  %vm453_vm2 = vcmp.ge.s32.totalorder %v212_v54, 1073741824  ;;  %vm457_vm3 = vcmp.ge.s32.totalorder %v213_v55, 1073741824  ;;  %vm461_vm4 = vcmp.ge.s32.totalorder %v214_v56, 1073741824 }
  0x3c   :  { %vm465_vm5 = vcmp.ge.s32.totalorder %v215_v57, 1073741824  ;;  %vm469_vm6 = vcmp.ge.s32.totalorder %v216_v58, 1073741824  ;;  %vm473_vm7 = vcmp.ge.s32.totalorder %v217_v61, 1073741824  ;;  %vm477_vm8 = vcmp.ge.s32.totalorder %v218_v62, 1073741824 }
  0x3d   :  { %vm481_vm9 = vcmp.ge.s32.totalorder %v219_v63, 1073741824  ;;  %vm485_vm10 = vcmp.ge.s32.totalorder %v220_v0, 1073741824  ;;  %vm489_vm11 = vcmp.ge.s32.totalorder %v221_v1, 1073741824  ;;  %vm493_vm12 = vcmp.ge.s32.totalorder %v222_v2, 1073741824 }
  0x3e   :  { %vm497_vm13 = vcmp.ge.s32.totalorder %v223_v3, 1073741824  ;;  %vm501_vm14 = vcmp.ge.s32.totalorder %v224_v4, 1073741824  ;;  %vm505_vm15 = vcmp.ge.s32.totalorder %v225_v5, 1073741824  ;;  %v248_v24 = vperm.slane %v228_v6, 0 }
  0x3f   :  { %v249_v25 = vperm.slane %v228_v6, 1  ;;  %v250_v26 = vperm.slane %v228_v6, 2  ;;  %v251_v27 = vperm.slane %v228_v6, 3  ;;  %v252_v28 = vperm.slane %v228_v6, 4 }
  0x40   :  { %v253_v29 = vperm.slane %v228_v6, 5  ;;  %v254_v30 = vperm.slane %v228_v6, 6  ;;  %v255_v31 = vperm.slane %v228_v6, 7  ;;  %v256_v32 = vperm.slane %v229_v8, 0 }
  0x41   :  { %v257_v33 = vperm.slane %v229_v8, 1  ;;  %v258_v34 = vperm.slane %v229_v8, 2  ;;  %v259_v35 = vperm.slane %v229_v8, 3  ;;  %v260_v36 = vperm.slane %v229_v8, 4 }
  0x42   :  { %v261_v37 = vperm.slane %v229_v8, 5  ;;  %v262_v38 = vperm.slane %v229_v8, 6  ;;  %v263_v39 = vperm.slane %v229_v8, 7  ;;  %v280_v40 = vsel %vm445_vm0, %v248_v24, 0.0 }
  0x43   :  { %v281_v41 = vsel %vm449_vm1, %v249_v25, 0.0  ;;  %v282_v42 = vsel %vm453_vm2, %v250_v26, 0.0  ;;  %v283_v43 = vsel %vm457_vm3, %v251_v27, 0.0  ;;  %v284_v44 = vsel %vm461_vm4, %v252_v28, 0.0 }
  0x44   :  { %v285_v45 = vsel %vm465_vm5, %v253_v29, 0.0  ;;  %v286_v46 = vsel %vm469_vm6, %v254_v30, 0.0  ;;  %v287_v47 = vsel %vm473_vm7, %v255_v31, 0.0  ;;  %v288_v48 = vsel %vm477_vm8, %v256_v32, 0.0 }
  0x45   :  { %v289_v49 = vsel %vm481_vm9, %v257_v33, 0.0  ;;  %v290_v50 = vsel %vm485_vm10, %v258_v34, 0.0  ;;  %v291_v51 = vsel %vm489_vm11, %v259_v35, 0.0  ;;  %v292_v52 = vsel %vm493_vm12, %v260_v36, 0.0 }
  0x46   :  { %v293_v53 = vsel %vm497_vm13, %v261_v37, 0.0  ;;  %v294_v54 = vsel %vm501_vm14, %v262_v38, 0.0  ;;  %v295_v55 = vsel %vm505_vm15, %v263_v39, 0.0  ;;  %v312_v56 = vrot.slane %v281_v41, 7 }
  0x47   :  { %v313_v57 = vrot.slane %v282_v42, 6  ;;  %v314_v58 = vrot.slane %v283_v43, 5  ;;  %v315_v59 = vrot.slane %v284_v44, 4  ;;  %v316_v60 = vrot.slane %v285_v45, 3 }
  0x48   :  { %v317_v61 = vrot.slane %v286_v46, 2  ;;  %v318_v62 = vrot.slane %v287_v47, 1  ;;  %v319_v63 = vrot.slane %v289_v49, 7  ;;  %v320_v0 = vrot.slane %v290_v50, 6 }
  0x49   :  { %v321_v1 = vrot.slane %v291_v51, 5  ;;  %v322_v2 = vrot.slane %v292_v52, 4  ;;  %v323_v3 = vrot.slane %v293_v53, 3  ;;  %v324_v4 = vrot.slane %v294_v54, 2 }
  0x4a   :  { %v325_v5 = vrot.slane %v295_v55, 1  ;;  %vm326_vm0 = vcmask 1040384   ;;  %vm328_vm1 = vcmask 1042434   ;;  %vm330_vm2 = vcmask 1041408  }
  0x4b   :  { %v327_v6 = vsel %vm326_vm0, %v280_v40, %v312_v56  ;;  %v329_v8 = vsel %vm328_vm1, %v313_v57, %v314_v58  ;;  %vm332_vm3 = vcmask 1044484   ;;  %vm334_vm4 = vcmask 1046534  }
  0x4c   :  { %v331_v9 = vsel %vm330_vm2, %v327_v6, %v329_v8  ;;  %v333_v10 = vsel %vm332_vm3, %v315_v59, %v316_v60  ;;  %v335_v11 = vsel %vm334_vm4, %v317_v61, %v318_v62  ;;  %vm336_vm5 = vcmask 1045508  }
  0x4d   :  { %v337_v12 = vsel %vm336_vm5, %v333_v10, %v335_v11  ;;  %vm338_vm6 = vcmask 1043456   ;;  %v340_v7 = vsel %vm326_vm0, %v288_v48, %v319_v63  ;;  %v341_v13 = vsel %vm328_vm1, %v320_v0, %v321_v1 }
  0x4e   :  { %v339_v14 = vsel %vm338_vm6, %v331_v9, %v337_v12  ;;  %v342_v15 = vsel %vm330_vm2, %v340_v7, %v341_v13  ;;  %v343_v16 = vsel %vm332_vm3, %v322_v2, %v323_v3  ;;  %v344_v17 = vsel %vm334_vm4, %v324_v4, %v325_v5 }
  0x4f   :  { %v345_v18 = vsel %vm336_vm5, %v343_v16, %v344_v17  ;;  %349 = vst [vmem:[#allocation7] sm:$0xff] %v339_v14 }
  0x50   :  { %v346_v19 = vsel %vm338_vm6, %v342_v15, %v345_v18 }
  0x51   :  { %350 = vst [vmem:[#allocation7 + $0x8] sm:$0xff] %v346_v19 }
  0x52   :  { %361 = dma.vmem_to_hbm [thread:$0]  %s357_s1, 256, %s359_s19, [#allocation6]  }
  0x53   :  { %420 = dma.done.wait [#allocation6], 256  }
  0x54   :  { %421 = vsyncadd [#allocation6], 4294967040 }
  0x55   :  { %366 = vsyncpa [#allocation5], 1 }
  0x56   :  { %367 = vsyncpa [#allocation6], 1 }

</bundles_post_ra>
